<compile_context>
chip_gen: v7x
topology: tpu7x:2x2x1
jax: 0.10.0
libtpu: 0.0.40
codegen_flags: <defaults>
</compile_context>

<pallas_src>
import functools

import jax
import jax.numpy as jnp
from jax.experimental import pallas as pl
from jax.experimental.pallas import tpu as pltpu

_LANE = 128      # lane width: last dim of every block is padded to a multiple of this
_SUBLANE = 8     # sublane width: batch tiles are padded to a multiple of this


def _round_up(v, m):
    return ((v + m - 1) // m) * m


# ---------------------------------------------------------------------------
# Fused MLP-block kernel: one batch tile, all Linear(+ReLU) layers in VMEM.
# refs = (x_ref, w0_ref, b0_ref, w1_ref, b1_ref, ..., o_ref)
# ---------------------------------------------------------------------------
def _mlp_block_kernel(*refs, relu_flags, compute_dtype):
    x_ref, o_ref = refs[0], refs[-1]
    param_refs = refs[1:-1]
    n_layers = len(param_refs) // 2

    h = x_ref[...]                                   # (TB, K_pad) compute_dtype
    for li in range(n_layers):
        w = param_refs[2 * li][...]                  # (K_pad, N_pad) compute_dtype
        b = param_refs[2 * li + 1][...]              # (1, N_pad)    f32
        acc = jnp.dot(h, w, preferred_element_type=jnp.float32)   # MXU, f32 acc
        acc = acc + b                                # broadcast over batch tile
        if relu_flags[li]:
            acc = jnp.maximum(acc, 0.0)
        # keep the intermediate lane-dense in VMEM; re-cast for next MXU pass
        h = acc.astype(compute_dtype) if li + 1 < n_layers else acc
    o_ref[...] = h.astype(o_ref.dtype)


def _fused_mlp_forward(x, padded_params, relu_flags, out_features,
                       *, compute_dtype, max_batch_tile=128):
    """Run the whole (padded) Linear/ReLU stack as one pallas_call over batch tiles."""
    orig_dtype = x.dtype
    B, K = x.shape
    k_pad = padded_params[0][0].shape[0]
    n_pad = padded_params[-1][0].shape[1]

    # batch tiling: multiple of 8 sublanes, <= max_batch_tile rows per grid step
    tb = min(max_batch_tile, _round_up(B, _SUBLANE))
    b_pad = _round_up(B, tb)

    x_p = x
    if (b_pad, k_pad) != (B, K):
        x_p = jnp.pad(x, ((0, b_pad - B), (0, k_pad - K)))
    x_p = x_p.astype(compute_dtype)

    inputs = [x_p]
    in_specs = [pl.BlockSpec((tb, k_pad), lambda i: (i, 0))]
    for w_p, b_p in padded_params:
        inputs.append(w_p)                                        # bf16, padded, resident
        inputs.append(b_p)                                        # f32,  padded, resident
        in_specs.append(pl.BlockSpec(w_p.shape, lambda i: (0, 0)))
        in_specs.append(pl.BlockSpec(b_p.shape, lambda i: (0, 0)))

    kernel = functools.partial(
        _mlp_block_kernel,
        relu_flags=tuple(relu_flags),
        compute_dtype=compute_dtype,
    )

    out_padded = pl.pallas_call(
        kernel,
        out_shape=jax.ShapeDtypeStruct((b_pad, n_pad), orig_dtype),
        grid=(b_pad // tb,),
        in_specs=in_specs,
        out_specs=pl.BlockSpec((tb, n_pad), lambda i: (i, 0)),
        compiler_params=pltpu.CompilerParams(dimension_semantics=("parallel",)),
    )(*inputs)

    return out_padded[:B, :out_features]


# ---------------------------------------------------------------------------
# BasicBlock: JAX/Pallas equivalent of the PyTorch wrapper around nn.Sequential.
# `layers` is a list of ("linear", w, b) / ("relu",) entries; the whole stack is
# executed by a single fused Pallas kernel.
# ---------------------------------------------------------------------------
class BasicBlock:
    def __init__(self, layers, *, compute_dtype=jnp.bfloat16, max_batch_tile=128):
        self.layers = list(layers)
        self.compute_dtype = compute_dtype
        self.max_batch_tile = max_batch_tile
        self._build()

    def __getitem__(self, index):
        return self.layers[index]

    def _build(self):
        params = []       # [(w_padded [K_pad,N_pad] compute_dtype, b_padded [1,N_pad] f32)]
        relu_flags = []   # fuse a trailing ReLU into each Linear
        leading_relu = False

        i, n = 0, len(self.layers)
        while i < n and self.layers[i][0] == "relu":   # ReLU before any Linear
            leading_relu = True
            i += 1
        out_features = None
        while i < n:
            layer = self.layers[i]
            if layer[0] != "linear":
                raise ValueError(f"unsupported layer {layer[0]}")
            _, w, b = layer
            j = i + 1
            fuse_relu = False
            while j < n and self.layers[j][0] == "relu":
                fuse_relu = True
                j += 1
            k_in, k_out = w.shape
            k_in_p, k_out_p = _round_up(k_in, _LANE), _round_up(k_out, _LANE)
            w_p = jnp.pad(jnp.asarray(w, jnp.float32),
                          ((0, k_in_p - k_in), (0, k_out_p - k_out))
                          ).astype(self.compute_dtype)
            b2 = jnp.asarray(b, jnp.float32).reshape(1, -1)
            b_p = jnp.pad(b2, ((0, 0), (0, k_out_p - k_out)))
            params.append((w_p, b_p))
            relu_flags.append(fuse_relu)
            out_features = k_out
            i = j

        self._params = params
        self._relu_flags = relu_flags
        self._leading_relu = leading_relu
        self._out_features = out_features

    def forward(self, x):
        if not self._params:               # Sequential with no Linear layers
            return jnp.maximum(x, 0.0) if self._leading_relu else x
        if self._leading_relu:             # rare: ReLU before the first Linear
            x = jnp.maximum(x, 0.0)
        return _fused_mlp_forward(
            x, self._params, self._relu_flags, self._out_features,
            compute_dtype=self.compute_dtype, max_batch_tile=self.max_batch_tile)

    def __call__(self, x):
        return self.forward(x)


def _init_linear(key, in_features, out_features, dtype=jnp.float32):
    # Deterministic init mimicking PyTorch's default U(-1/sqrt(fan_in), +...).
    kw, kb = jax.random.split(key)
    bound = 1.0 / jnp.sqrt(in_features)
    w = jax.random.uniform(kw, (in_features, out_features), dtype,
                           minval=-bound, maxval=bound)
    b = jax.random.uniform(kb, (1, out_features), dtype,
                           minval=-bound, maxval=bound)
    return w, b


if __name__ == "__main__":
    key = jax.random.PRNGKey(0)
    k_x, k_l1, k_l2 = jax.random.split(key, 3)

    # small but non-divisible batch to exercise batch tiling + padding
    batch, d_in, d_hidden, d_out = 200, 32, 64, 32

    w1, b1 = _init_linear(k_l1, d_in, d_hidden)
    w2, b2 = _init_linear(k_l2, d_hidden, d_out)

    # The wrapped "nn.Sequential": Linear -> ReLU -> Linear -> ReLU
    block = BasicBlock([
        ("linear", w1, b1),
        ("relu",),
        ("linear", w2, b2),
        ("relu",),
    ])

    x = jax.random.normal(k_x, (batch, d_in), jnp.float32)

    apply_block = jax.jit(block.forward)
    out = jax.block_until_ready(apply_block(x))

    # Pure-JAX reference with the same bf16 operand rounding / f32 accumulation.
    cd = jnp.bfloat16
    h_ref = jnp.dot(x.astype(cd), w1.astype(cd),
                    preferred_element_type=jnp.float32) + b1
    h_ref = jnp.maximum(h_ref, 0.0).astype(cd)
    ref = jnp.dot(h_ref, w2.astype(cd),
                  preferred_element_type=jnp.float32) + b2
    ref = jnp.maximum(ref, 0.0)

    assert out.shape == (batch, d_out)
    assert out.dtype == x.dtype
    assert jnp.allclose(out, ref, atol=1e-3, rtol=1e-3), \
        float(jnp.max(jnp.abs(out - ref)))

    print("KERNEL_OK")
</pallas_src>

<mosaic_0001>
module attributes {stable_mosaic.version = 11 : i64} {
  func.func @_mlp_block_kernel(%arg0: i32, %arg1: memref<128x128xbf16, #tpu.memory_space<vmem>>, %arg2: memref<128x128xbf16, #tpu.memory_space<vmem>>, %arg3: memref<1x128xf32, #tpu.memory_space<vmem>>, %arg4: memref<128x128xbf16, #tpu.memory_space<vmem>>, %arg5: memref<1x128xf32, #tpu.memory_space<vmem>>, %arg6: memref<128x128xf32, #tpu.memory_space<vmem>>) attributes {dimension_semantics = [#tpu.dimension_semantics<parallel>], iteration_bounds = array<i64: 2>, scalar_prefetch = 0 : i64, scratch_operands = 0 : i64, tpu.core_type = #tpu.core_type<tc>, window_params = [{transform_indices = @transform_0, window_bounds = array<i64: 128, 128>}, {pipeline_mode = #tpu.pipeline_mode<synchronous>, transform_indices = @transform_1, window_bounds = array<i64: 128, 128>}, {pipeline_mode = #tpu.pipeline_mode<synchronous>, transform_indices = @transform_2, window_bounds = array<i64: 1, 128>}, {pipeline_mode = #tpu.pipeline_mode<synchronous>, transform_indices = @transform_3, window_bounds = array<i64: 128, 128>}, {pipeline_mode = #tpu.pipeline_mode<synchronous>, transform_indices = @transform_4, window_bounds = array<i64: 1, 128>}, {transform_indices = @transform_5, window_bounds = array<i64: 128, 128>}]} {
    %c0 = arith.constant 0 : index
    %c0_0 = arith.constant 0 : index
    %0 = vector.load %arg1[%c0, %c0_0] : memref<128x128xbf16, #tpu.memory_space<vmem>>, vector<128x128xbf16>
    %c0_1 = arith.constant 0 : index
    %c0_2 = arith.constant 0 : index
    %1 = vector.load %arg2[%c0_1, %c0_2] : memref<128x128xbf16, #tpu.memory_space<vmem>>, vector<128x128xbf16>
    %c0_3 = arith.constant 0 : index
    %c0_4 = arith.constant 0 : index
    %2 = vector.load %arg3[%c0_3, %c0_4] : memref<1x128xf32, #tpu.memory_space<vmem>>, vector<1x128xf32>
    %cst = arith.constant dense<0.000000e+00> : vector<128x128xf32>
    %3 = tpu.matmul %0, %1, %cst {dimension_numbers = #tpu.dot_dimension_numbers<[1], [0], [0], [1], [0, 0, 1, 1], [], []>} : vector<128x128xbf16>, vector<128x128xbf16>, vector<128x128xf32> -> vector<128x128xf32>
    %4 = vector.broadcast %2 : vector<1x128xf32> to vector<128x128xf32>
    %5 = arith.addf %3, %4 : vector<128x128xf32>
    %cst_5 = arith.constant 0.000000e+00 : f32
    %6 = vector.broadcast %cst_5 : f32 to vector<128x128xf32>
    %7 = arith.maximumf %5, %6 : vector<128x128xf32>
    %8 = arith.truncf %7 : vector<128x128xf32> to vector<128x128xbf16>
    %c0_6 = arith.constant 0 : index
    %c0_7 = arith.constant 0 : index
    %9 = vector.load %arg4[%c0_6, %c0_7] : memref<128x128xbf16, #tpu.memory_space<vmem>>, vector<128x128xbf16>
    %c0_8 = arith.constant 0 : index
    %c0_9 = arith.constant 0 : index
    %10 = vector.load %arg5[%c0_8, %c0_9] : memref<1x128xf32, #tpu.memory_space<vmem>>, vector<1x128xf32>
    %cst_10 = arith.constant dense<0.000000e+00> : vector<128x128xf32>
    %11 = tpu.matmul %8, %9, %cst_10 {dimension_numbers = #tpu.dot_dimension_numbers<[1], [0], [0], [1], [0, 0, 1, 1], [], []>} : vector<128x128xbf16>, vector<128x128xbf16>, vector<128x128xf32> -> vector<128x128xf32>
    %12 = vector.broadcast %10 : vector<1x128xf32> to vector<128x128xf32>
    %13 = arith.addf %11, %12 : vector<128x128xf32>
    %cst_11 = arith.constant 0.000000e+00 : f32
    %14 = vector.broadcast %cst_11 : f32 to vector<128x128xf32>
    %15 = arith.maximumf %13, %14 : vector<128x128xf32>
    %c0_12 = arith.constant 0 : index
    %c0_13 = arith.constant 0 : index
    %16 = vector.load %arg6[%c0_12, %c0_13] : memref<128x128xf32, #tpu.memory_space<vmem>>, vector<128x128xf32>
    tpu.vector_store %arg6[%c0_12, %c0_13], %15 {strides = array<i32>} : memref<128x128xf32, #tpu.memory_space<vmem>>, vector<128x128xf32>,
    return
  }
  func.func @transform_0(%arg0: i32) -> (i32, i32) {
    %c0_i32 = arith.constant 0 : i32
    %c0_i32_0 = arith.constant 0 : i32
    return %arg0, %c0_i32 : i32, i32
  }
  func.func @transform_1(%arg0: i32) -> (i32, i32) {
    %c0_i32 = arith.constant 0 : i32
    %c0_i32_0 = arith.constant 0 : i32
    %c0_i32_1 = arith.constant 0 : i32
    return %c0_i32, %c0_i32_0 : i32, i32
  }
  func.func @transform_2(%arg0: i32) -> (i32, i32) {
    %c0_i32 = arith.constant 0 : i32
    %c0_i32_0 = arith.constant 0 : i32
    %c0_i32_1 = arith.constant 0 : i32
    return %c0_i32, %c0_i32_0 : i32, i32
  }
  func.func @transform_3(%arg0: i32) -> (i32, i32) {
    %c0_i32 = arith.constant 0 : i32
    %c0_i32_0 = arith.constant 0 : i32
    %c0_i32_1 = arith.constant 0 : i32
    return %c0_i32, %c0_i32_0 : i32, i32
  }
  func.func @transform_4(%arg0: i32) -> (i32, i32) {
    %c0_i32 = arith.constant 0 : i32
    %c0_i32_0 = arith.constant 0 : i32
    %c0_i32_1 = arith.constant 0 : i32
    return %c0_i32, %c0_i32_0 : i32, i32
  }
  func.func @transform_5(%arg0: i32) -> (i32, i32) {
    %c0_i32 = arith.constant 0 : i32
    %c0_i32_0 = arith.constant 0 : i32
    return %arg0, %c0_i32 : i32, i32
  }
}

</mosaic_0001>

<bundles_post_ra>
// kernel: forward.1
= control target key start
LH: loop header
LB: loop body
LE: loop exit
PB: predicated region body
PF: predicated region fallthrough
CT: control target
= control target key end

     0   :  { %s944_s18 = smov 0   ;;  %s1047_s0 = inlined_call_operand.vmem [shape: bf16[256,128], index: 0, kind: input, shape index: {}]   ;;  %s1048_s1 = inlined_call_operand.vmem [shape: bf16[128,128], index: 1, kind: input, shape index: {}]   ;;  %s1049_s2 = inlined_call_operand.vmem [shape: f32[1,128], index: 2, kind: input, shape index: {}]   ;;  %s1050_s3 = inlined_call_operand.vmem [shape: bf16[128,128], index: 3, kind: input, shape index: {}]   ;;  %s1051_s4 = inlined_call_operand.vmem [shape: f32[1,128], index: 4, kind: input, shape index: {}]   ;;  %s1052_s5 = inlined_call_operand.vmem [shape: f32[256,128], index: 5, kind: output, shape index: {}]  }
   0x1 LB: > { %s741_s19 = sadd.s32 4294967295, %s912_s18   ;;  %p745_p0 = scmp.ge.s32.totalorder %s912_s18, 1  ;;  %s912_s18 = sphi %s944_s18, %s15_s18  }
   0x2   : > { %p188_p1 = scmp.lt.s32.totalorder %s912_s18, 3 }
   0x4   : > { %p189_p2 = pnand %p745_p0, %p188_p1 }
   0x5   : > { %v882_v0 = vld [vmem:[%s1048_s1] sm:$0xff] (!%p189_p2)   ;;  %s746_s22 = sshll.u32 (!%p189_p2), %s741_s19, 4  ;;  %v883_v1 = vld [vmem:[%s1048_s1 + $0x8] sm:$0xff] (!%p189_p2)   ;;  %v884_v2 = vld [vmem:[%s1048_s1 + $0x10] sm:$0xff] (!%p189_p2)  }
   0x6   : > { %192 = sbr.rel (%p189_p2) target bundleno = 504 (0x1f8), region = 40  ;;  %p217_p3 = scmp.lt.s32.totalorder (!%p189_p2), %s746_s22, 31  ;;  %810 = vmatprep.subr.bf16.mxu0 (!%p189_p2), %v882_v0  ;;  %v885_v3 = vld [vmem:[%s1048_s1 + $0x18] sm:$0xff] (!%p189_p2)   ;;  %v886_v5 = vld [vmem:[%s1048_s1 + $0x20] sm:$0xff] (!%p189_p2)   ;;  %v887_v6 = vld [vmem:[%s1048_s1 + $0x28] sm:$0xff] (!%p189_p2)  }
   0x7   : > { %811 = vmatpush3.bf16.msra.mxu0 (!%p189_p2), %v882_v0  ;;  %v898_v7 = vld [vmem:[%s1050_s3] sm:$0xff] (!%p189_p2)   ;;  %v899_v8 = vld [vmem:[%s1050_s3 + $0x8] sm:$0xff] (!%p189_p2)   ;;  %v888_v9 = vld [vmem:[%s1048_s1 + $0x30] sm:$0xff] (!%p189_p2)  }
   0x8   : > { %812 = vmatprep.subr.bf16.mxu0 (!%p189_p2), %v883_v1  ;;  %842 = vmatprep.subr.bf16.mxu1 (!%p189_p2), %v898_v7  ;;  %v900_v10 = vld [vmem:[%s1050_s3 + $0x10] sm:$0xff] (!%p189_p2)   ;;  %v889_v11 = vld [vmem:[%s1048_s1 + $0x38] sm:$0xff] (!%p189_p2)   ;;  %v902_v13 = vld [vmem:[%s1050_s3 + $0x20] sm:$0xff] (!%p189_p2)  }
   0x9   : > { %843 = vmatpush3.bf16.msra.mxu1 (!%p189_p2), %v898_v7  ;;  %v901_v12 = vld [vmem:[%s1050_s3 + $0x18] sm:$0xff] (!%p189_p2)   ;;  %v903_v16 = vld [vmem:[%s1050_s3 + $0x28] sm:$0xff] (!%p189_p2)   ;;  %v904_v22 = vld [vmem:[%s1050_s3 + $0x30] sm:$0xff] (!%p189_p2)  }
   0xa   : > { %844 = vmatprep.subr.bf16.mxu1 (!%p189_p2), %v899_v8  ;;  %v905_v23 = vld [vmem:[%s1050_s3 + $0x38] sm:$0xff] (!%p189_p2)   ;;  %v750_v24 = vld [vmem:[%s1049_s2] ss:$0 sm:$0xff] (!%p189_p2) }
   0xb   : > { %813 = vmatpush3.bf16.msra.mxu0 (!%p189_p2), %v883_v1 }
   0xc   : > { %814 = vmatprep.subr.bf16.mxu0 (!%p189_p2), %v884_v2 }
   0xd   : > { %s1054_s22 = smov (!%p217_p3, %s746_s22), 31  ;;  %845 = vmatpush3.bf16.msra.mxu1 %v899_v8 }
   0xe   : > { %s747_s27 = sshll.u32 %s1054_s22, 2  ;;  %846 = vmatprep.subr.bf16.mxu1 %v900_v10  ;;  %s749_s13 = sshll.u32 %s1054_s22, 3 }
   0xf   : > { %s967_s30 = scalar_lea.vmem %s1047_s0, %s747_s27  ;;  %815 = vmatpush3.bf16.msra.mxu0 %v884_v2  ;;  %s1026_s16 = scalar_lea.vmem %s1052_s5, %s749_s13 }
  0x10   : > { %v890_v4 = vld [vmem:[%s967_s30] sm:$0xff]   ;;  %816 = vmatprep.subr.bf16.mxu0 %v885_v3  ;;  %v891_v14 = vld [vmem:[%s967_s30 + $0x8] sm:$0xff]   ;;  %v892_v15 = vld [vmem:[%s967_s30 + $0x10] sm:$0xff]  }
  0x11   : > { %826 = vmatprep.mubr.bf16.mxu0 %v890_v4  ;;  %847 = vmatpush3.bf16.msra.mxu1 %v900_v10  ;;  %v893_v17 = vld [vmem:[%s967_s30 + $0x18] sm:$0xff]   ;;  %v894_v18 = vld [vmem:[%s967_s30 + $0x20] sm:$0xff]   ;;  %v895_v19 = vld [vmem:[%s967_s30 + $0x28] sm:$0xff]  }
  0x12   : > { %848 = vmatprep.subr.bf16.mxu1 %v901_v12  ;;  %v896_v20 = vld [vmem:[%s967_s30 + $0x30] sm:$0xff]   ;;  %v897_v21 = vld [vmem:[%s967_s30 + $0x38] sm:$0xff]  }
  0x13   : > { %817 = vmatpush3.bf16.msra.mxu0 %v885_v3 }
  0x14   : > { %818 = vmatprep.subr.bf16.mxu0 %v886_v5 }
  0x15   : > { %849 = vmatpush3.bf16.msra.mxu1 %v901_v12 }
  0x16   : > { %850 = vmatprep.subr.bf16.mxu1 %v902_v13 }
  0x17   : > { %819 = vmatpush3.bf16.msra.mxu0 %v886_v5 }
  0x18   : > { %820 = vmatprep.subr.bf16.mxu0 %v887_v6 }
  0x19   : > { %851 = vmatpush3.bf16.msra.mxu1 %v902_v13 }
  0x1a   : > { %852 = vmatprep.subr.bf16.mxu1 %v903_v16 }
  0x1b   : > { %821 = vmatpush3.bf16.msra.mxu0 %v887_v6 }
  0x1c   : > { %822 = vmatprep.subr.bf16.mxu0 %v888_v9 }
  0x1d   : > { %853 = vmatpush3.bf16.msra.mxu1 %v903_v16 }
  0x1e   : > { %854 = vmatprep.subr.bf16.mxu1 %v904_v22 }
  0x1f   : > { %823 = vmatpush3.bf16.msra.mxu0 %v888_v9 }
  0x20   : > { %824 = vmatprep.subr.bf16.mxu0 %v889_v11 }
  0x21   : > { %855 = vmatpush3.bf16.msra.mxu1 %v904_v22 }
  0x22   : > { %856 = vmatprep.subr.bf16.mxu1 %v905_v23 }
  0x23   : > { %825 = vmatpush3.bf16.msra.mxu0 %v889_v11 }
  0x25   : > { %857 = vmatpush3.bf16.msra.mxu1 %v905_v23 }
  0x26   : > { %827 = vmatmul.mubr.bf16.vlgmr.msra.gmra.mrb[0].mxu0 %v891_v14 }
  0x27   : > { %830 = vmatprep.mubr.bf16.mxu0 %v892_v15 }
  0x2e   : > { %831 = vmatmul.mubr.bf16.gmra.mrb[4].mxu0 %v893_v17  ;;  %v767_v17 = vld [vmem:[%s1051_s4] ss:$0 sm:$0xff] }
  0x2f   : > { %834 = vmatprep.mubr.bf16.mxu0 %v894_v18 }
  0x36   : > { %835 = vmatmul.mubr.bf16.gmra.mrb[8].mxu0 %v895_v19 }
  0x37   : > { %838 = vmatprep.mubr.bf16.mxu0 %v896_v20 }
  0x3e   : > { %839 = vmatmul.mubr.bf16.gmra.mrb[12].mxu0 %v897_v21 }
  0xf9   : > { %v828_v25 = vpop.f32.mrb[0].mxu0 }
  0xfa   : > { %v407_v26 = vadd.f32 %v828_v25, %v750_v24  ;;  %v398_v27 = vpop.f32.mrb[1].mxu0 }
  0xfb   : > { %v399_v28 = vadd.f32 %v750_v24, %v398_v27  ;;  %v829_v29 = vpop.f32.mrb[2].mxu0 }
  0xfc   : > { %v410_v30 = vadd.f32 %v829_v29, %v750_v24  ;;  %v401_v31 = vpop.f32.mrb[3].mxu0  ;;  %v463_v33 = vmax.f32 %v407_v26, 0.0 }
  0xfd   : > { %v402_v32 = vadd.f32 %v750_v24, %v401_v31  ;;  %v461_v35 = vmax.f32 %v399_v28, 0.0 }
  0xfe   : > { %v464_v34 = vmax.f32 %v410_v30, 0.0 }
  0xff   : > { %v462_v36 = vmax.f32 %v402_v32, 0.0 }
 0x100   : > { %v478_v37 = vpack.c.bf16 %v464_v34, %v463_v33 }
 0x101   : > { %v832_v38 = vpop.f32.mrb[4].mxu0  ;;  %v477_v39 = vpack.c.bf16 %v462_v36, %v461_v35 }
 0x102   : > { %v423_v40 = vadd.f32 %v832_v38, %v750_v24  ;;  %v414_v41 = vpop.f32.mrb[5].mxu0 }
 0x103   : > { %v415_v42 = vadd.f32 %v750_v24, %v414_v41  ;;  %v833_v43 = vpop.f32.mrb[6].mxu0  ;;  %858 = vmatprep.mubr.bf16.mxu1 %v477_v39 }
 0x104   : > { %v426_v44 = vadd.f32 %v833_v43, %v750_v24  ;;  %v417_v45 = vpop.f32.mrb[7].mxu0  ;;  %859 = vmatmul.mubr.bf16.vlgmr.msra.gmra.mrb[0].mxu1 %v478_v37  ;;  %v467_v47 = vmax.f32 %v423_v40, 0.0 }
 0x105   : > { %v418_v46 = vadd.f32 %v750_v24, %v417_v45  ;;  %v465_v49 = vmax.f32 %v415_v42, 0.0 }
 0x106   : > { %v468_v48 = vmax.f32 %v426_v44, 0.0 }
 0x107   : > { %v466_v50 = vmax.f32 %v418_v46, 0.0 }
 0x108   : > { %v480_v51 = vpack.c.bf16 %v468_v48, %v467_v47 }
 0x109   : > { %v479_v52 = vpack.c.bf16 %v466_v50, %v465_v49  ;;  %v836_v53 = vpop.f32.mrb[8].mxu0 }
 0x10a   : > { %v439_v54 = vadd.f32 %v836_v53, %v750_v24  ;;  %v430_v55 = vpop.f32.mrb[9].mxu0 }
 0x10b   : > { %v431_v56 = vadd.f32 %v750_v24, %v430_v55  ;;  %v837_v57 = vpop.f32.mrb[10].mxu0  ;;  %862 = vmatprep.mubr.bf16.mxu1 %v479_v52 }
 0x10c   : > { %v442_v58 = vadd.f32 %v837_v57, %v750_v24  ;;  %v433_v59 = vpop.f32.mrb[11].mxu0  ;;  %863 = vmatmul.mubr.bf16.gmra.mrb[4].mxu1 %v480_v51  ;;  %v471_v61 = vmax.f32 %v439_v54, 0.0 }
 0x10d   : > { %v434_v60 = vadd.f32 %v750_v24, %v433_v59  ;;  %v469_v63 = vmax.f32 %v431_v56, 0.0 }
 0x10e   : > { %v472_v62 = vmax.f32 %v442_v58, 0.0 }
 0x10f   : > { %v470_v0 = vmax.f32 %v434_v60, 0.0 }
 0x110   : > { %v482_v1 = vpack.c.bf16 %v472_v62, %v471_v61 }
 0x111   : > { %v481_v2 = vpack.c.bf16 %v470_v0, %v469_v63  ;;  %v840_v3 = vpop.f32.mrb[12].mxu0 }
 0x112   : > { %v455_v4 = vadd.f32 %v840_v3, %v750_v24  ;;  %v446_v5 = vpop.f32.mrb[13].mxu0 }
 0x113   : > { %v447_v6 = vadd.f32 %v750_v24, %v446_v5  ;;  %v841_v7 = vpop.f32.mrb[14].mxu0  ;;  %866 = vmatprep.mubr.bf16.mxu1 %v481_v2 }
 0x114   : > { %v458_v8 = vadd.f32 %v841_v7, %v750_v24  ;;  %v449_v9 = vpop.f32.mrb[15].mxu0  ;;  %867 = vmatmul.mubr.bf16.gmra.mrb[8].mxu1 %v482_v1  ;;  %v475_v11 = vmax.f32 %v455_v4, 0.0 }
 0x115   : > { %v450_v10 = vadd.f32 %v750_v24, %v449_v9  ;;  %v473_v13 = vmax.f32 %v447_v6, 0.0 }
 0x116   : > { %v476_v12 = vmax.f32 %v458_v8, 0.0 }
 0x117   : > { %v474_v14 = vmax.f32 %v450_v10, 0.0 }
 0x118   : > { %v484_v15 = vpack.c.bf16 %v476_v12, %v475_v11 }
 0x119   : > { %v483_v16 = vpack.c.bf16 %v474_v14, %v473_v13 }
 0x11b   : > { %870 = vmatprep.mubr.bf16.mxu1 %v483_v16 }
 0x11c   : > { %871 = vmatmul.mubr.bf16.gmra.mrb[12].mxu1 %v484_v15 }
 0x1d7   : > { %v860_v18 = vpop.f32.mrb[0].mxu1 }
 0x1d8   : > { %v599_v19 = vadd.f32 %v860_v18, %v767_v17  ;;  %v590_v20 = vpop.f32.mrb[1].mxu1 }
 0x1d9   : > { %v591_v21 = vadd.f32 %v767_v17, %v590_v20  ;;  %v861_v22 = vpop.f32.mrb[2].mxu1 }
 0x1da   : > { %v655_v23 = vmax.f32 %v599_v19, 0.0  ;;  %v602_v24 = vadd.f32 %v861_v22, %v767_v17  ;;  %v593_v25 = vpop.f32.mrb[3].mxu1 }
 0x1db   : > { %v653_v26 = vmax.f32 %v591_v21, 0.0  ;;  %v594_v27 = vadd.f32 %v767_v17, %v593_v25 }
 0x1dc   : > { %671 = vst [vmem:[%s1026_s16 + $0x10] sm:$0xff] %v655_v23  ;;  %v656_v28 = vmax.f32 %v602_v24, 0.0 }
 0x1dd   : > { %669 = vst [vmem:[%s1026_s16] sm:$0xff] %v653_v26  ;;  %v654_v29 = vmax.f32 %v594_v27, 0.0 }
 0x1de   : > { %672 = vst [vmem:[%s1026_s16 + $0x18] sm:$0xff] %v656_v28 }
 0x1df   : > { %670 = vst [vmem:[%s1026_s16 + $0x8] sm:$0xff] %v654_v29  ;;  %v864_v30 = vpop.f32.mrb[4].mxu1 }
 0x1e0   : > { %v615_v31 = vadd.f32 %v864_v30, %v767_v17  ;;  %v606_v32 = vpop.f32.mrb[5].mxu1 }
 0x1e1   : > { %v607_v33 = vadd.f32 %v767_v17, %v606_v32  ;;  %v865_v34 = vpop.f32.mrb[6].mxu1 }
 0x1e2   : > { %v659_v35 = vmax.f32 %v615_v31, 0.0  ;;  %v618_v36 = vadd.f32 %v865_v34, %v767_v17  ;;  %v609_v37 = vpop.f32.mrb[7].mxu1 }
 0x1e3   : > { %v657_v38 = vmax.f32 %v607_v33, 0.0  ;;  %v610_v39 = vadd.f32 %v767_v17, %v609_v37 }
 0x1e4   : > { %675 = vst [vmem:[%s1026_s16 + $0x30] sm:$0xff] %v659_v35  ;;  %v660_v40 = vmax.f32 %v618_v36, 0.0 }
 0x1e5   : > { %673 = vst [vmem:[%s1026_s16 + $0x20] sm:$0xff] %v657_v38  ;;  %v658_v41 = vmax.f32 %v610_v39, 0.0 }
 0x1e6   : > { %676 = vst [vmem:[%s1026_s16 + $0x38] sm:$0xff] %v660_v40 }
 0x1e7   : > { %674 = vst [vmem:[%s1026_s16 + $0x28] sm:$0xff] %v658_v41  ;;  %v868_v42 = vpop.f32.mrb[8].mxu1 }
 0x1e8   : > { %v631_v43 = vadd.f32 %v868_v42, %v767_v17  ;;  %v622_v44 = vpop.f32.mrb[9].mxu1 }
 0x1e9   : > { %v623_v45 = vadd.f32 %v767_v17, %v622_v44  ;;  %v869_v46 = vpop.f32.mrb[10].mxu1 }
 0x1ea   : > { %v663_v47 = vmax.f32 %v631_v43, 0.0  ;;  %v634_v48 = vadd.f32 %v869_v46, %v767_v17  ;;  %v625_v49 = vpop.f32.mrb[11].mxu1 }
 0x1eb   : > { %v661_v50 = vmax.f32 %v623_v45, 0.0  ;;  %v626_v51 = vadd.f32 %v767_v17, %v625_v49 }
 0x1ec   : > { %679 = vst [vmem:[%s1026_s16 + $0x50] sm:$0xff] %v663_v47  ;;  %v664_v52 = vmax.f32 %v634_v48, 0.0 }
 0x1ed   : > { %677 = vst [vmem:[%s1026_s16 + $0x40] sm:$0xff] %v661_v50  ;;  %v662_v53 = vmax.f32 %v626_v51, 0.0 }
 0x1ee   : > { %680 = vst [vmem:[%s1026_s16 + $0x58] sm:$0xff] %v664_v52 }
 0x1ef   : > { %678 = vst [vmem:[%s1026_s16 + $0x48] sm:$0xff] %v662_v53  ;;  %v872_v54 = vpop.f32.mrb[12].mxu1 }
 0x1f0   : > { %v647_v55 = vadd.f32 %v872_v54, %v767_v17  ;;  %v638_v56 = vpop.f32.mrb[13].mxu1 }
 0x1f1   : > { %v639_v57 = vadd.f32 %v767_v17, %v638_v56  ;;  %v873_v58 = vpop.f32.mrb[14].mxu1 }
 0x1f2   : > { %v667_v59 = vmax.f32 %v647_v55, 0.0  ;;  %v650_v60 = vadd.f32 %v873_v58, %v767_v17  ;;  %v641_v61 = vpop.f32.mrb[15].mxu1 }
 0x1f3   : > { %v665_v62 = vmax.f32 %v639_v57, 0.0  ;;  %v642_v63 = vadd.f32 %v767_v17, %v641_v61 }
 0x1f4   : > { %683 = vst [vmem:[%s1026_s16 + $0x70] sm:$0xff] %v667_v59  ;;  %v668_v0 = vmax.f32 %v650_v60, 0.0 }
 0x1f5   : > { %681 = vst [vmem:[%s1026_s16 + $0x60] sm:$0xff] %v665_v62  ;;  %v666_v1 = vmax.f32 %v642_v63, 0.0 }
 0x1f6   : > { %684 = vst [vmem:[%s1026_s16 + $0x78] sm:$0xff] %v668_v0 }
 0x1f7   : > { %682 = vst [vmem:[%s1026_s16 + $0x68] sm:$0xff] %v666_v1 }
 0x1f8 PF: > { %s15_s18 = sadd.s32 1, %s912_s18  }
 0x1f9   : > { %p12_p4 = scmp.ge.s32.totalorder %s15_s18, 4  }
 0x1fb   :  { %14 = sbr.rel (!%p12_p4) target bundleno = 1 (0x1), region = 70 }

</bundles_post_ra>
